<compile_context>
chip_gen: v5e
topology: v5e:2x2
jax: 0.10.0
libtpu: 0.0.40
codegen_flags: <defaults>
</compile_context>

<pallas_src>
import jax
import jax.numpy as jnp
from jax.experimental import pallas as pl
from jax.experimental.pallas import tpu as pltpu

# ------------- configuration (mirrors the MosProSampler args we exercise) -------------
ALPHABET = 'ARNDCQEGHILKMFPSTWYV'
VOCAB = len(ALPHABET)            # 20 (Encoder.vocab_size)
SEQ_LEN = 8                      # small synthetic sequence length
GIBBS_SAMPLES = 16               # small stand-in for gibbs_samples=500
TEMP = 1.0                       # temperature
BALANCE_W1 = 1.0                 # balance_weight_1
BALANCE_W2 = 6.0                 # balance_weight_2
LAMBDA_ = 1.0                    # lambda_
NORMALIZE_GRAD = True            # config.normalize_grad
_EPS = 1e-30                     # numeric guard for norms / Frobenius denominator
# gradient_compose_method = 'pareto', lambda_method = 'lambda', inverse_sign_* = False


# ------------------------------ Pallas kernels ------------------------------

def _source_kernel(x_ref, w1_ref, w2_ref, scores_ref, gx_ref, delta_ref):
    """One pass over the source one-hot: both predictor scores, the Pareto-composed
    gradient gx (x-independent, computed exactly once per sequence) and delta_ij."""
    x = x_ref[...]                                          # (L, V) one-hot
    w1 = w1_ref[...]                                        # (L, V)
    w2 = w2_ref[...]

    # predictor_i(x) = sum(x * W_i)  -- packed into a single (1, 2) output
    s1 = jnp.sum(x * w1, axis=(0, 1), keepdims=True)        # (1, 1)
    s2 = jnp.sum(x * w2, axis=(0, 1), keepdims=True)
    scores_ref[...] = jnp.concatenate([s1, s2], axis=-1)    # (1, 2)

    # _compose_two_gradients ('pareto' + lambda_method='lambda'); grad_i == W_i here.
    g1, g2 = w1, w2
    if NORMALIZE_GRAD:
        g1 = g1 * jax.lax.rsqrt(jnp.sum(g1 * g1, axis=(0, 1), keepdims=True) + _EPS)
        g2 = g2 * jax.lax.rsqrt(jnp.sum(g2 * g2, axis=(0, 1), keepdims=True) + _EPS)
    m = BALANCE_W1 * g1
    n = BALANCE_W2 * g2
    t_nn = jnp.sum(n * n, axis=(0, 1), keepdims=True)
    t_mn = jnp.sum(m * n, axis=(0, 1), keepdims=True)
    fro = jnp.sum((m - n) * (m - n), axis=(0, 1), keepdims=True)
    alpha = jnp.clip((t_nn - t_mn) / (fro + _EPS), 0.0, 1.0)         # (1, 1)
    gx = alpha * g1 + LAMBDA_ * (1.0 - alpha) * g2                    # (L, V)
    gx_ref[...] = gx

    # delta_ij = gx - (gx * x).sum(-1, keepdims)
    gx_cur = jnp.sum(gx * x, axis=-1, keepdims=True)                  # (L, 1)
    delta_ref[...] = gx - gx_cur                                      # (L, V)


def _mutant_kernel(res_ref, aa_ref, x_ref, w1_ref, w2_ref, gx_ref, scores_ref, out_ref):
    """All N single-point mutants at once, from indices only (no mutant one-hot).

    Outputs packed (N, 4) = [ms1, ms2, q_ij_mutant/q_ij_source, accept_prob].
    Since the mutant differs from the source in exactly one row, both the mutant scores
    and the flattened-softmax ratio have exact closed forms in terms of the source
    per-position tables, evaluated here with one small MXU matmul row-gather.
    """
    num_mut = res_ref.shape[0]
    seq_len, vocab = x_ref.shape

    x = x_ref[...]                                          # (L, V) source one-hot
    w1 = w1_ref[...]
    w2 = w2_ref[...]
    gx = gx_ref[...]
    s = scores_ref[...]                                     # (1, 2) [s1, s2]
    s1 = s[:, 0:1]
    s2 = s[:, 1:2]

    # source delta_ij and its (max-shifted) exp row structure
    gx_cur = jnp.sum(gx * x, axis=-1, keepdims=True)        # (L, 1)
    delta = gx - gx_cur                                     # (L, V)
    mx = jnp.max(delta, axis=(0, 1), keepdims=True)         # (1, 1)
    esh = jnp.exp((delta - mx) / TEMP)                      # (L, V)
    t_all = jnp.sum(esh, axis=(0, 1), keepdims=True)        # (1, 1) shifted Z_source

    # one-hot selectors of each mutant's edited position / new amino acid
    r_oh = (jax.lax.broadcasted_iota(jnp.int32, (num_mut, seq_len), 1)
            == res_ref[...]).astype(jnp.float32)            # (N, L)
    a_oh = (jax.lax.broadcasted_iota(jnp.int32, (num_mut, vocab), 1)
            == aa_ref[...]).astype(jnp.float32)             # (N, V)

    # single MXU matmul gathers, per mutant, row r of every per-position table
    tables = jnp.concatenate([w1, w2, gx, x, esh], axis=-1)               # (L, 5V)
    rows = jnp.dot(r_oh, tables, preferred_element_type=jnp.float32)      # (N, 5V)
    w1_row = rows[:, 0:vocab]
    w2_row = rows[:, vocab:2 * vocab]
    gx_row = rows[:, 2 * vocab:3 * vocab]
    x_row = rows[:, 3 * vocab:4 * vocab]
    esh_row = rows[:, 4 * vocab:5 * vocab]

    w1_new = jnp.sum(w1_row * a_oh, axis=-1, keepdims=True)   # W1[r, a_new]   (N, 1)
    w2_new = jnp.sum(w2_row * a_oh, axis=-1, keepdims=True)
    gx_new = jnp.sum(gx_row * a_oh, axis=-1, keepdims=True)
    w1_old = jnp.sum(w1_row * x_row, axis=-1, keepdims=True)  # W1[r, a_src]
    w2_old = jnp.sum(w2_row * x_row, axis=-1, keepdims=True)
    gx_old = jnp.sum(gx_row * x_row, axis=-1, keepdims=True)
    s_r = jnp.sum(esh_row, axis=-1, keepdims=True)            # shifted row-sum at r

    # linear predictors => exact single-point-mutation score update
    ms1 = s1 + w1_new - w1_old                                # (N, 1)
    ms2 = s2 + w2_new - w2_old
    delta_score = (ms1 - s1 + ms2 - s2) * 0.5

    # q_ij ratio of the flattened softmaxes (mutant / source), closed form:
    #   q_src = exp(d_ra/T)/Z_src ;  q_mut = 1/Z_mut,
    #   Z_mut = Z_src - S[r] + exp(-d_ra/T)*S[r]   (the shift by mx cancels)
    d_ra = gx_new - gx_old                                    # source delta_ij[r, a_new]
    e_neg = jnp.exp(-d_ra / TEMP)
    z_mut = (t_all - s_r) + e_neg * s_r
    q_ratio = e_neg * t_all / z_mut
    accept_prob = jnp.exp(delta_score) * q_ratio

    out_ref[...] = jnp.concatenate([ms1, ms2, q_ratio, accept_prob], axis=-1)  # (N, 4)


# ------------------------------ Pallas wrappers ------------------------------

def _full_spec(shape):
    return pl.BlockSpec(shape, lambda i: tuple(0 for _ in shape))


def source_stats(x_onehot, w1, w2):
    """Returns (scores (1,2), gx (L,V), delta_ij (L,V)) for the source sequence."""
    L, V = x_onehot.shape
    return pl.pallas_call(
        _source_kernel,
        grid=(1,),
        in_specs=[_full_spec((L, V)), _full_spec((L, V)), _full_spec((L, V))],
        out_specs=(_full_spec((1, 2)), _full_spec((L, V)), _full_spec((L, V))),
        out_shape=(jax.ShapeDtypeStruct((1, 2), jnp.float32),
                   jax.ShapeDtypeStruct((L, V), jnp.float32),
                   jax.ShapeDtypeStruct((L, V), jnp.float32)),
        compiler_params=pltpu.CompilerParams(dimension_semantics=("arbitrary",)),
    )(x_onehot, w1, w2)


def mutant_stats(res_idx, aa_idx, x_onehot, w1, w2, gx, scores):
    """Packed per-mutant stats (N, 4) = [ms1, ms2, q_ij_ratio, accept_prob]."""
    N = res_idx.shape[0]
    L, V = x_onehot.shape
    return pl.pallas_call(
        _mutant_kernel,
        grid=(1,),
        in_specs=[_full_spec((N, 1)), _full_spec((N, 1)),
                  _full_spec((L, V)), _full_spec((L, V)), _full_spec((L, V)),
                  _full_spec((L, V)), _full_spec((1, 2))],
        out_specs=_full_spec((N, 4)),
        out_shape=jax.ShapeDtypeStruct((N, 4), jnp.float32),
        compiler_params=pltpu.CompilerParams(dimension_semantics=("arbitrary",)),
    )(res_idx.reshape(N, 1).astype(jnp.int32),
      aa_idx.reshape(N, 1).astype(jnp.int32),
      x_onehot, w1, w2, gx, scores)


# ------------------------------ forward glue ------------------------------

def mospro_forward_single(token_seq, w1, w2, key):
    """One iteration of MosProSampler.forward's per-sequence loop (numeric parts)."""
    L = token_seq.shape[0]
    V = VOCAB
    seq_one_hot = jax.nn.one_hot(token_seq, V, dtype=jnp.float32)          # (L, V)

    # _evaluate_one_hot_2 + _calc_local_diff_2 fused into a single source kernel
    scores, gx, delta_ij = source_stats(seq_one_hot, w1, w2)
    pred_score_1 = scores[0, 0]
    pred_score_2 = scores[0, 1]

    # GWG proposal: OneHotCategorical(logits=delta_ij.flatten()/temp), N samples
    k_prop, k_mh = jax.random.split(key)
    flat_idx = jax.random.categorical(k_prop, delta_ij.reshape(-1) / TEMP,
                                      shape=(GIBBS_SAMPLES,))
    res_idx = flat_idx // V
    aa_idx = flat_idx % V
    pos = jnp.arange(L)
    mutated_seqs = jnp.where(pos[None, :] == res_idx[:, None],
                             aa_idx[:, None], token_seq[None, :])          # (N, L)

    # compute_mutant_stats; torch filtered num_edits==0 rows (dynamic shape) -- here
    # we keep all rows and fold the filter into the final accept mask.
    num_edits = jnp.sum(mutated_seqs != token_seq[None, :], axis=-1)

    # _evaluate_mutants + _metropolis_hasting, all per-mutant quantities from one kernel
    stats = mutant_stats(res_idx, aa_idx, seq_one_hot, w1, w2, gx, scores)  # (N, 4)
    ms1 = stats[:, 0]
    ms2 = stats[:, 1]
    accept_prob = stats[:, 3]

    u = jax.random.uniform(k_mh, accept_prob.shape, dtype=jnp.float32)
    mh_step = accept_prob < u        # (sic -- matches the reference implementation)

    accept_mask = mh_step & (num_edits > 0)
    # TODO(synk): decoding accepted token sequences back to strings and the pandas
    # DataFrame assembly have no Pallas/JAX equivalent; numeric outputs are returned.
    return mutated_seqs, accept_mask, ms1, ms2, pred_score_1, pred_score_2


if __name__ == "__main__":
    key = jax.random.PRNGKey(0)
    k_w1, k_w2, k_seq, k_fwd = jax.random.split(key, 4)

    # deterministic synthetic predictor parameters (linear PWM scorers)
    w1 = jax.random.normal(k_w1, (SEQ_LEN, VOCAB), dtype=jnp.float32)
    w2 = jax.random.normal(k_w2, (SEQ_LEN, VOCAB), dtype=jnp.float32)

    # batch of 2 tokenized source sequences (Encoder.encode output)
    num_seqs = 2
    tokenized_seqs = jax.random.randint(k_seq, (num_seqs, SEQ_LEN), 0, VOCAB,
                                        dtype=jnp.int32)

    fwd = jax.jit(mospro_forward_single)   # one executable: both kernels + glue fused
    fwd_keys = jax.random.split(k_fwd, num_seqs)
    results = [fwd(tokenized_seqs[i], w1, w2, fwd_keys[i]) for i in range(num_seqs)]

    for out in results:
        for arr in out:
            jax.block_until_ready(arr)

    print("KERNEL_OK")
</pallas_src>

<mosaic_0001>
module attributes {stable_mosaic.version = 11 : i64} {
  func.func @_source_kernel(%arg0: i32, %arg1: memref<8x20xf32, #tpu.memory_space<vmem>>, %arg2: memref<8x20xf32, #tpu.memory_space<vmem>>, %arg3: memref<8x20xf32, #tpu.memory_space<vmem>>, %arg4: memref<1x2xf32, #tpu.memory_space<vmem>>, %arg5: memref<8x20xf32, #tpu.memory_space<vmem>>, %arg6: memref<8x20xf32, #tpu.memory_space<vmem>>) attributes {dimension_semantics = [#tpu.dimension_semantics<arbitrary>], iteration_bounds = array<i64: 1>, scalar_prefetch = 0 : i64, scratch_operands = 0 : i64, tpu.core_type = #tpu.core_type<tc>, window_params = [{pipeline_mode = #tpu.pipeline_mode<synchronous>, transform_indices = @transform_0, window_bounds = array<i64: 8, 20>}, {pipeline_mode = #tpu.pipeline_mode<synchronous>, transform_indices = @transform_1, window_bounds = array<i64: 8, 20>}, {pipeline_mode = #tpu.pipeline_mode<synchronous>, transform_indices = @transform_2, window_bounds = array<i64: 8, 20>}, {pipeline_mode = #tpu.pipeline_mode<synchronous>, transform_indices = @transform_3, window_bounds = array<i64: 1, 2>}, {pipeline_mode = #tpu.pipeline_mode<synchronous>, transform_indices = @transform_4, window_bounds = array<i64: 8, 20>}, {pipeline_mode = #tpu.pipeline_mode<synchronous>, transform_indices = @transform_5, window_bounds = array<i64: 8, 20>}]} {
    %c0 = arith.constant 0 : index
    %c0_0 = arith.constant 0 : index
    %0 = vector.load %arg1[%c0, %c0_0] : memref<8x20xf32, #tpu.memory_space<vmem>>, vector<8x20xf32>
    %c0_1 = arith.constant 0 : index
    %c0_2 = arith.constant 0 : index
    %1 = vector.load %arg2[%c0_1, %c0_2] : memref<8x20xf32, #tpu.memory_space<vmem>>, vector<8x20xf32>
    %c0_3 = arith.constant 0 : index
    %c0_4 = arith.constant 0 : index
    %2 = vector.load %arg3[%c0_3, %c0_4] : memref<8x20xf32, #tpu.memory_space<vmem>>, vector<8x20xf32>
    %3 = arith.mulf %0, %1 : vector<8x20xf32>
    %4 = vector.shape_cast %3 : vector<8x20xf32> to vector<1x8x20xf32>
    %cst = arith.constant dense<0.000000e+00> : vector<1xf32>
    %5 = vector.multi_reduction <add>, %4, %cst [1, 2] : vector<1x8x20xf32> to vector<1xf32>
    %6 = vector.shape_cast %5 : vector<1xf32> to vector<1x1x1xf32>
    %7 = vector.extract %6[0, 0, 0] : f32 from vector<1x1x1xf32>
    %8 = vector.broadcast %7 : f32 to vector<1x1xf32>
    %9 = arith.mulf %0, %2 : vector<8x20xf32>
    %10 = vector.shape_cast %9 : vector<8x20xf32> to vector<1x8x20xf32>
    %cst_5 = arith.constant dense<0.000000e+00> : vector<1xf32>
    %11 = vector.multi_reduction <add>, %10, %cst_5 [1, 2] : vector<1x8x20xf32> to vector<1xf32>
    %12 = vector.shape_cast %11 : vector<1xf32> to vector<1x1x1xf32>
    %13 = vector.extract %12[0, 0, 0] : f32 from vector<1x1x1xf32>
    %14 = vector.broadcast %13 : f32 to vector<1x1xf32>
    %15 = tpu.concatenate %8, %14 in 1 : vector<1x1xf32>, vector<1x1xf32> -> vector<1x2xf32>
    %c0_6 = arith.constant 0 : index
    %c0_7 = arith.constant 0 : index
    %16 = vector.load %arg4[%c0_6, %c0_7] : memref<1x2xf32, #tpu.memory_space<vmem>>, vector<1x2xf32>
    tpu.vector_store %arg4[%c0_6, %c0_7], %15 {strides = array<i32>} : memref<1x2xf32, #tpu.memory_space<vmem>>, vector<1x2xf32>,
    %17 = arith.mulf %1, %1 : vector<8x20xf32>
    %18 = vector.shape_cast %17 : vector<8x20xf32> to vector<1x8x20xf32>
    %cst_8 = arith.constant dense<0.000000e+00> : vector<1xf32>
    %19 = vector.multi_reduction <add>, %18, %cst_8 [1, 2] : vector<1x8x20xf32> to vector<1xf32>
    %20 = vector.shape_cast %19 : vector<1xf32> to vector<1x1x1xf32>
    %21 = vector.extract %20[0, 0, 0] : f32 from vector<1x1x1xf32>
    %22 = vector.broadcast %21 : f32 to vector<1x1xf32>
    %cst_9 = arith.constant 1.000000e-30 : f32
    %23 = vector.broadcast %cst_9 : f32 to vector<1x1xf32>
    %24 = arith.addf %22, %23 : vector<1x1xf32>
    %25 = math.rsqrt %24 : vector<1x1xf32>
    %26 = vector.broadcast %25 : vector<1x1xf32> to vector<8x20xf32>
    %27 = arith.mulf %1, %26 : vector<8x20xf32>
    %28 = arith.mulf %2, %2 : vector<8x20xf32>
    %29 = vector.shape_cast %28 : vector<8x20xf32> to vector<1x8x20xf32>
    %cst_10 = arith.constant dense<0.000000e+00> : vector<1xf32>
    %30 = vector.multi_reduction <add>, %29, %cst_10 [1, 2] : vector<1x8x20xf32> to vector<1xf32>
    %31 = vector.shape_cast %30 : vector<1xf32> to vector<1x1x1xf32>
    %32 = vector.extract %31[0, 0, 0] : f32 from vector<1x1x1xf32>
    %33 = vector.broadcast %32 : f32 to vector<1x1xf32>
    %cst_11 = arith.constant 1.000000e-30 : f32
    %34 = vector.broadcast %cst_11 : f32 to vector<1x1xf32>
    %35 = arith.addf %33, %34 : vector<1x1xf32>
    %36 = math.rsqrt %35 : vector<1x1xf32>
    %37 = vector.broadcast %36 : vector<1x1xf32> to vector<8x20xf32>
    %38 = arith.mulf %2, %37 : vector<8x20xf32>
    %cst_12 = arith.constant 1.000000e+00 : f32
    %39 = vector.broadcast %cst_12 : f32 to vector<8x20xf32>
    %40 = arith.mulf %39, %27 : vector<8x20xf32>
    %cst_13 = arith.constant 6.000000e+00 : f32
    %41 = vector.broadcast %cst_13 : f32 to vector<8x20xf32>
    %42 = arith.mulf %41, %38 : vector<8x20xf32>
    %43 = arith.mulf %42, %42 : vector<8x20xf32>
    %44 = vector.shape_cast %43 : vector<8x20xf32> to vector<1x8x20xf32>
    %cst_14 = arith.constant dense<0.000000e+00> : vector<1xf32>
    %45 = vector.multi_reduction <add>, %44, %cst_14 [1, 2] : vector<1x8x20xf32> to vector<1xf32>
    %46 = vector.shape_cast %45 : vector<1xf32> to vector<1x1x1xf32>
    %47 = vector.extract %46[0, 0, 0] : f32 from vector<1x1x1xf32>
    %48 = vector.broadcast %47 : f32 to vector<1x1xf32>
    %49 = arith.mulf %40, %42 : vector<8x20xf32>
    %50 = vector.shape_cast %49 : vector<8x20xf32> to vector<1x8x20xf32>
    %cst_15 = arith.constant dense<0.000000e+00> : vector<1xf32>
    %51 = vector.multi_reduction <add>, %50, %cst_15 [1, 2] : vector<1x8x20xf32> to vector<1xf32>
    %52 = vector.shape_cast %51 : vector<1xf32> to vector<1x1x1xf32>
    %53 = vector.extract %52[0, 0, 0] : f32 from vector<1x1x1xf32>
    %54 = vector.broadcast %53 : f32 to vector<1x1xf32>
    %55 = arith.subf %40, %42 : vector<8x20xf32>
    %56 = arith.subf %40, %42 : vector<8x20xf32>
    %57 = arith.mulf %55, %56 : vector<8x20xf32>
    %58 = vector.shape_cast %57 : vector<8x20xf32> to vector<1x8x20xf32>
    %cst_16 = arith.constant dense<0.000000e+00> : vector<1xf32>
    %59 = vector.multi_reduction <add>, %58, %cst_16 [1, 2] : vector<1x8x20xf32> to vector<1xf32>
    %60 = vector.shape_cast %59 : vector<1xf32> to vector<1x1x1xf32>
    %61 = vector.extract %60[0, 0, 0] : f32 from vector<1x1x1xf32>
    %62 = vector.broadcast %61 : f32 to vector<1x1xf32>
    %63 = arith.subf %48, %54 : vector<1x1xf32>
    %cst_17 = arith.constant 1.000000e-30 : f32
    %64 = vector.broadcast %cst_17 : f32 to vector<1x1xf32>
    %65 = arith.addf %62, %64 : vector<1x1xf32>
    %66 = arith.divf %63, %65 : vector<1x1xf32>
    %cst_18 = arith.constant 0.000000e+00 : f32
    %cst_19 = arith.constant 1.000000e+00 : f32
    %67 = vector.broadcast %cst_18 : f32 to vector<1x1xf32>
    %68 = arith.maximumf %67, %66 : vector<1x1xf32>
    %69 = vector.broadcast %cst_19 : f32 to vector<1x1xf32>
    %70 = arith.minimumf %69, %68 : vector<1x1xf32>
    %71 = vector.broadcast %70 : vector<1x1xf32> to vector<8x20xf32>
    %72 = arith.mulf %71, %27 : vector<8x20xf32>
    %cst_20 = arith.constant 1.000000e+00 : f32
    %73 = vector.broadcast %cst_20 : f32 to vector<1x1xf32>
    %74 = arith.subf %73, %70 : vector<1x1xf32>
    %cst_21 = arith.constant 1.000000e+00 : f32
    %75 = vector.broadcast %cst_21 : f32 to vector<1x1xf32>
    %76 = arith.mulf %75, %74 : vector<1x1xf32>
    %77 = vector.broadcast %76 : vector<1x1xf32> to vector<8x20xf32>
    %78 = arith.mulf %77, %38 : vector<8x20xf32>
    %79 = arith.addf %72, %78 : vector<8x20xf32>
    %c0_22 = arith.constant 0 : index
    %c0_23 = arith.constant 0 : index
    %80 = vector.load %arg5[%c0_22, %c0_23] : memref<8x20xf32, #tpu.memory_space<vmem>>, vector<8x20xf32>
    tpu.vector_store %arg5[%c0_22, %c0_23], %79 {strides = array<i32>} : memref<8x20xf32, #tpu.memory_space<vmem>>, vector<8x20xf32>,
    %81 = arith.mulf %79, %0 : vector<8x20xf32>
    %cst_24 = arith.constant dense<0.000000e+00> : vector<8xf32>
    %82 = vector.multi_reduction <add>, %81, %cst_24 [1] : vector<8x20xf32> to vector<8xf32>
    %83 = vector.shape_cast %82 : vector<8xf32> to vector<8x1xf32>
    %84 = vector.broadcast %83 : vector<8x1xf32> to vector<8x20xf32>
    %85 = arith.subf %79, %84 : vector<8x20xf32>
    %c0_25 = arith.constant 0 : index
    %c0_26 = arith.constant 0 : index
    %86 = vector.load %arg6[%c0_25, %c0_26] : memref<8x20xf32, #tpu.memory_space<vmem>>, vector<8x20xf32>
    tpu.vector_store %arg6[%c0_25, %c0_26], %85 {strides = array<i32>} : memref<8x20xf32, #tpu.memory_space<vmem>>, vector<8x20xf32>,
    return
  }
  func.func @transform_0(%arg0: i32) -> (i32, i32) {
    %c0_i32 = arith.constant 0 : i32
    %c0_i32_0 = arith.constant 0 : i32
    %c0_i32_1 = arith.constant 0 : i32
    return %c0_i32, %c0_i32_0 : i32, i32
  }
  func.func @transform_1(%arg0: i32) -> (i32, i32) {
    %c0_i32 = arith.constant 0 : i32
    %c0_i32_0 = arith.constant 0 : i32
    %c0_i32_1 = arith.constant 0 : i32
    return %c0_i32, %c0_i32_0 : i32, i32
  }
  func.func @transform_2(%arg0: i32) -> (i32, i32) {
    %c0_i32 = arith.constant 0 : i32
    %c0_i32_0 = arith.constant 0 : i32
    %c0_i32_1 = arith.constant 0 : i32
    return %c0_i32, %c0_i32_0 : i32, i32
  }
  func.func @transform_3(%arg0: i32) -> (i32, i32) {
    %c0_i32 = arith.constant 0 : i32
    %c0_i32_0 = arith.constant 0 : i32
    %c0_i32_1 = arith.constant 0 : i32
    return %c0_i32, %c0_i32_0 : i32, i32
  }
  func.func @transform_4(%arg0: i32) -> (i32, i32) {
    %c0_i32 = arith.constant 0 : i32
    %c0_i32_0 = arith.constant 0 : i32
    %c0_i32_1 = arith.constant 0 : i32
    return %c0_i32, %c0_i32_0 : i32, i32
  }
  func.func @transform_5(%arg0: i32) -> (i32, i32) {
    %c0_i32 = arith.constant 0 : i32
    %c0_i32_0 = arith.constant 0 : i32
    %c0_i32_1 = arith.constant 0 : i32
    return %c0_i32, %c0_i32_0 : i32, i32
  }
}

module attributes {stable_mosaic.version = 11 : i64} {
  func.func @_mutant_kernel(%arg0: i32, %arg1: memref<16x1xi32, #tpu.memory_space<vmem>>, %arg2: memref<16x1xi32, #tpu.memory_space<vmem>>, %arg3: memref<8x20xf32, #tpu.memory_space<vmem>>, %arg4: memref<8x20xf32, #tpu.memory_space<vmem>>, %arg5: memref<8x20xf32, #tpu.memory_space<vmem>>, %arg6: memref<8x20xf32, #tpu.memory_space<vmem>>, %arg7: memref<1x2xf32, #tpu.memory_space<vmem>>, %arg8: memref<16x4xf32, #tpu.memory_space<vmem>>) attributes {dimension_semantics = [#tpu.dimension_semantics<arbitrary>], iteration_bounds = array<i64: 1>, scalar_prefetch = 0 : i64, scratch_operands = 0 : i64, tpu.core_type = #tpu.core_type<tc>, window_params = [{pipeline_mode = #tpu.pipeline_mode<synchronous>, transform_indices = @transform_0, window_bounds = array<i64: 16, 1>}, {pipeline_mode = #tpu.pipeline_mode<synchronous>, transform_indices = @transform_1, window_bounds = array<i64: 16, 1>}, {pipeline_mode = #tpu.pipeline_mode<synchronous>, transform_indices = @transform_2, window_bounds = array<i64: 8, 20>}, {pipeline_mode = #tpu.pipeline_mode<synchronous>, transform_indices = @transform_3, window_bounds = array<i64: 8, 20>}, {pipeline_mode = #tpu.pipeline_mode<synchronous>, transform_indices = @transform_4, window_bounds = array<i64: 8, 20>}, {pipeline_mode = #tpu.pipeline_mode<synchronous>, transform_indices = @transform_5, window_bounds = array<i64: 8, 20>}, {pipeline_mode = #tpu.pipeline_mode<synchronous>, transform_indices = @transform_6, window_bounds = array<i64: 1, 2>}, {pipeline_mode = #tpu.pipeline_mode<synchronous>, transform_indices = @transform_7, window_bounds = array<i64: 16, 4>}]} {
    %c0 = arith.constant 0 : index
    %c0_0 = arith.constant 0 : index
    %0 = vector.load %arg3[%c0, %c0_0] : memref<8x20xf32, #tpu.memory_space<vmem>>, vector<8x20xf32>
    %c0_1 = arith.constant 0 : index
    %c0_2 = arith.constant 0 : index
    %1 = vector.load %arg4[%c0_1, %c0_2] : memref<8x20xf32, #tpu.memory_space<vmem>>, vector<8x20xf32>
    %c0_3 = arith.constant 0 : index
    %c0_4 = arith.constant 0 : index
    %2 = vector.load %arg5[%c0_3, %c0_4] : memref<8x20xf32, #tpu.memory_space<vmem>>, vector<8x20xf32>
    %c0_5 = arith.constant 0 : index
    %c0_6 = arith.constant 0 : index
    %3 = vector.load %arg6[%c0_5, %c0_6] : memref<8x20xf32, #tpu.memory_space<vmem>>, vector<8x20xf32>
    %c0_7 = arith.constant 0 : index
    %c0_8 = arith.constant 0 : index
    %4 = vector.load %arg7[%c0_7, %c0_8] : memref<1x2xf32, #tpu.memory_space<vmem>>, vector<1x2xf32>
    %5 = vector.extract_strided_slice %4 {offsets = [0, 0], sizes = [1, 1], strides = [1, 1]} : vector<1x2xf32> to vector<1x1xf32>
    %6 = vector.extract_strided_slice %4 {offsets = [0, 1], sizes = [1, 1], strides = [1, 1]} : vector<1x2xf32> to vector<1x1xf32>
    %7 = arith.mulf %3, %0 : vector<8x20xf32>
    %cst = arith.constant dense<0.000000e+00> : vector<8xf32>
    %8 = vector.multi_reduction <add>, %7, %cst [1] : vector<8x20xf32> to vector<8xf32>
    %9 = vector.shape_cast %8 : vector<8xf32> to vector<8x1xf32>
    %10 = vector.broadcast %9 : vector<8x1xf32> to vector<8x20xf32>
    %11 = arith.subf %3, %10 : vector<8x20xf32>
    %12 = vector.shape_cast %11 : vector<8x20xf32> to vector<1x8x20xf32>
    %cst_9 = arith.constant dense<0xFF800000> : vector<1xf32>
    %13 = vector.multi_reduction <maximumf>, %12, %cst_9 [1, 2] : vector<1x8x20xf32> to vector<1xf32>
    %14 = vector.shape_cast %13 : vector<1xf32> to vector<1x1x1xf32>
    %15 = vector.extract %14[0, 0, 0] : f32 from vector<1x1x1xf32>
    %16 = vector.broadcast %15 : f32 to vector<1x1xf32>
    %17 = vector.broadcast %16 : vector<1x1xf32> to vector<8x20xf32>
    %18 = arith.subf %11, %17 : vector<8x20xf32>
    %cst_10 = arith.constant 1.000000e+00 : f32
    %19 = vector.broadcast %cst_10 : f32 to vector<8x20xf32>
    %20 = arith.divf %18, %19 : vector<8x20xf32>
    %21 = math.exp %20 : vector<8x20xf32>
    %22 = vector.shape_cast %21 : vector<8x20xf32> to vector<1x8x20xf32>
    %cst_11 = arith.constant dense<0.000000e+00> : vector<1xf32>
    %23 = vector.multi_reduction <add>, %22, %cst_11 [1, 2] : vector<1x8x20xf32> to vector<1xf32>
    %24 = vector.shape_cast %23 : vector<1xf32> to vector<1x1x1xf32>
    %25 = vector.extract %24[0, 0, 0] : f32 from vector<1x1x1xf32>
    %26 = vector.broadcast %25 : f32 to vector<1x1xf32>
    %27 = tpu.iota {dimensions = array<i32: 1>} : vector<16x8xi32>
    %c0_12 = arith.constant 0 : index
    %c0_13 = arith.constant 0 : index
    %28 = vector.load %arg1[%c0_12, %c0_13] : memref<16x1xi32, #tpu.memory_space<vmem>>, vector<16x1xi32>
    %29 = vector.broadcast %28 : vector<16x1xi32> to vector<16x8xi32>
    %30 = arith.cmpi eq, %27, %29 : vector<16x8xi32>
    %31 = arith.extui %30 : vector<16x8xi1> to vector<16x8xi32>
    %32 = arith.sitofp %31 : vector<16x8xi32> to vector<16x8xf32>
    %33 = tpu.iota {dimensions = array<i32: 1>} : vector<16x20xi32>
    %c0_14 = arith.constant 0 : index
    %c0_15 = arith.constant 0 : index
    %34 = vector.load %arg2[%c0_14, %c0_15] : memref<16x1xi32, #tpu.memory_space<vmem>>, vector<16x1xi32>
    %35 = vector.broadcast %34 : vector<16x1xi32> to vector<16x20xi32>
    %36 = arith.cmpi eq, %33, %35 : vector<16x20xi32>
    %37 = arith.extui %36 : vector<16x20xi1> to vector<16x20xi32>
    %38 = arith.sitofp %37 : vector<16x20xi32> to vector<16x20xf32>
    %39 = tpu.concatenate %1, %2, %3, %0, %21 in 1 : vector<8x20xf32>, vector<8x20xf32>, vector<8x20xf32>, vector<8x20xf32>, vector<8x20xf32> -> vector<8x100xf32>
    %cst_16 = arith.constant dense<0.000000e+00> : vector<16x100xf32>
    %40 = tpu.matmul %32, %39, %cst_16 {dimension_numbers = #tpu.dot_dimension_numbers<[1], [0], [0], [1], [0, 0, 1, 1], [], []>} : vector<16x8xf32>, vector<8x100xf32>, vector<16x100xf32> -> vector<16x100xf32>
    %41 = vector.extract_strided_slice %40 {offsets = [0, 0], sizes = [16, 20], strides = [1, 1]} : vector<16x100xf32> to vector<16x20xf32>
    %42 = vector.extract_strided_slice %40 {offsets = [0, 20], sizes = [16, 20], strides = [1, 1]} : vector<16x100xf32> to vector<16x20xf32>
    %43 = vector.extract_strided_slice %40 {offsets = [0, 40], sizes = [16, 20], strides = [1, 1]} : vector<16x100xf32> to vector<16x20xf32>
    %44 = vector.extract_strided_slice %40 {offsets = [0, 60], sizes = [16, 20], strides = [1, 1]} : vector<16x100xf32> to vector<16x20xf32>
    %45 = vector.extract_strided_slice %40 {offsets = [0, 80], sizes = [16, 20], strides = [1, 1]} : vector<16x100xf32> to vector<16x20xf32>
    %46 = arith.mulf %41, %38 : vector<16x20xf32>
    %cst_17 = arith.constant dense<0.000000e+00> : vector<16xf32>
    %47 = vector.multi_reduction <add>, %46, %cst_17 [1] : vector<16x20xf32> to vector<16xf32>
    %48 = vector.shape_cast %47 : vector<16xf32> to vector<16x1xf32>
    %49 = arith.mulf %42, %38 : vector<16x20xf32>
    %cst_18 = arith.constant dense<0.000000e+00> : vector<16xf32>
    %50 = vector.multi_reduction <add>, %49, %cst_18 [1] : vector<16x20xf32> to vector<16xf32>
    %51 = vector.shape_cast %50 : vector<16xf32> to vector<16x1xf32>
    %52 = arith.mulf %43, %38 : vector<16x20xf32>
    %cst_19 = arith.constant dense<0.000000e+00> : vector<16xf32>
    %53 = vector.multi_reduction <add>, %52, %cst_19 [1] : vector<16x20xf32> to vector<16xf32>
    %54 = vector.shape_cast %53 : vector<16xf32> to vector<16x1xf32>
    %55 = arith.mulf %41, %44 : vector<16x20xf32>
    %cst_20 = arith.constant dense<0.000000e+00> : vector<16xf32>
    %56 = vector.multi_reduction <add>, %55, %cst_20 [1] : vector<16x20xf32> to vector<16xf32>
    %57 = vector.shape_cast %56 : vector<16xf32> to vector<16x1xf32>
    %58 = arith.mulf %42, %44 : vector<16x20xf32>
    %cst_21 = arith.constant dense<0.000000e+00> : vector<16xf32>
    %59 = vector.multi_reduction <add>, %58, %cst_21 [1] : vector<16x20xf32> to vector<16xf32>
    %60 = vector.shape_cast %59 : vector<16xf32> to vector<16x1xf32>
    %61 = arith.mulf %43, %44 : vector<16x20xf32>
    %cst_22 = arith.constant dense<0.000000e+00> : vector<16xf32>
    %62 = vector.multi_reduction <add>, %61, %cst_22 [1] : vector<16x20xf32> to vector<16xf32>
    %63 = vector.shape_cast %62 : vector<16xf32> to vector<16x1xf32>
    %cst_23 = arith.constant dense<0.000000e+00> : vector<16xf32>
    %64 = vector.multi_reduction <add>, %45, %cst_23 [1] : vector<16x20xf32> to vector<16xf32>
    %65 = vector.shape_cast %64 : vector<16xf32> to vector<16x1xf32>
    %66 = vector.broadcast %5 : vector<1x1xf32> to vector<16x1xf32>
    %67 = arith.addf %66, %48 : vector<16x1xf32>
    %68 = arith.subf %67, %57 : vector<16x1xf32>
    %69 = vector.broadcast %6 : vector<1x1xf32> to vector<16x1xf32>
    %70 = arith.addf %69, %51 : vector<16x1xf32>
    %71 = arith.subf %70, %60 : vector<16x1xf32>
    %72 = vector.broadcast %5 : vector<1x1xf32> to vector<16x1xf32>
    %73 = arith.subf %68, %72 : vector<16x1xf32>
    %74 = arith.addf %73, %71 : vector<16x1xf32>
    %75 = vector.broadcast %6 : vector<1x1xf32> to vector<16x1xf32>
    %76 = arith.subf %74, %75 : vector<16x1xf32>
    %cst_24 = arith.constant 5.000000e-01 : f32
    %77 = vector.broadcast %cst_24 : f32 to vector<16x1xf32>
    %78 = arith.mulf %76, %77 : vector<16x1xf32>
    %79 = arith.subf %54, %63 : vector<16x1xf32>
    %cst_25 = arith.constant 0.000000e+00 : f32
    %80 = vector.broadcast %cst_25 : f32 to vector<16x1xf32>
    %81 = arith.subf %80, %79 : vector<16x1xf32>
    %cst_26 = arith.constant 1.000000e+00 : f32
    %82 = vector.broadcast %cst_26 : f32 to vector<16x1xf32>
    %83 = arith.divf %81, %82 : vector<16x1xf32>
    %84 = math.exp %83 : vector<16x1xf32>
    %85 = vector.broadcast %26 : vector<1x1xf32> to vector<16x1xf32>
    %86 = arith.subf %85, %65 : vector<16x1xf32>
    %87 = arith.mulf %84, %65 : vector<16x1xf32>
    %88 = arith.addf %86, %87 : vector<16x1xf32>
    %89 = vector.broadcast %26 : vector<1x1xf32> to vector<16x1xf32>
    %90 = arith.mulf %84, %89 : vector<16x1xf32>
    %91 = arith.divf %90, %88 : vector<16x1xf32>
    %92 = math.exp %78 : vector<16x1xf32>
    %93 = arith.mulf %92, %91 : vector<16x1xf32>
    %94 = tpu.concatenate %68, %71, %91, %93 in 1 : vector<16x1xf32>, vector<16x1xf32>, vector<16x1xf32>, vector<16x1xf32> -> vector<16x4xf32>
    %c0_27 = arith.constant 0 : index
    %c0_28 = arith.constant 0 : index
    %95 = vector.load %arg8[%c0_27, %c0_28] : memref<16x4xf32, #tpu.memory_space<vmem>>, vector<16x4xf32>
    tpu.vector_store %arg8[%c0_27, %c0_28], %94 {strides = array<i32>} : memref<16x4xf32, #tpu.memory_space<vmem>>, vector<16x4xf32>,
    return
  }
  func.func @transform_0(%arg0: i32) -> (i32, i32) {
    %c0_i32 = arith.constant 0 : i32
    %c0_i32_0 = arith.constant 0 : i32
    %c0_i32_1 = arith.constant 0 : i32
    return %c0_i32, %c0_i32_0 : i32, i32
  }
  func.func @transform_1(%arg0: i32) -> (i32, i32) {
    %c0_i32 = arith.constant 0 : i32
    %c0_i32_0 = arith.constant 0 : i32
    %c0_i32_1 = arith.constant 0 : i32
    return %c0_i32, %c0_i32_0 : i32, i32
  }
  func.func @transform_2(%arg0: i32) -> (i32, i32) {
    %c0_i32 = arith.constant 0 : i32
    %c0_i32_0 = arith.constant 0 : i32
    %c0_i32_1 = arith.constant 0 : i32
    return %c0_i32, %c0_i32_0 : i32, i32
  }
  func.func @transform_3(%arg0: i32) -> (i32, i32) {
    %c0_i32 = arith.constant 0 : i32
    %c0_i32_0 = arith.constant 0 : i32
    %c0_i32_1 = arith.constant 0 : i32
    return %c0_i32, %c0_i32_0 : i32, i32
  }
  func.func @transform_4(%arg0: i32) -> (i32, i32) {
    %c0_i32 = arith.constant 0 : i32
    %c0_i32_0 = arith.constant 0 : i32
    %c0_i32_1 = arith.constant 0 : i32
    return %c0_i32, %c0_i32_0 : i32, i32
  }
  func.func @transform_5(%arg0: i32) -> (i32, i32) {
    %c0_i32 = arith.constant 0 : i32
    %c0_i32_0 = arith.constant 0 : i32
    %c0_i32_1 = arith.constant 0 : i32
    return %c0_i32, %c0_i32_0 : i32, i32
  }
  func.func @transform_6(%arg0: i32) -> (i32, i32) {
    %c0_i32 = arith.constant 0 : i32
    %c0_i32_0 = arith.constant 0 : i32
    %c0_i32_1 = arith.constant 0 : i32
    return %c0_i32, %c0_i32_0 : i32, i32
  }
  func.func @transform_7(%arg0: i32) -> (i32, i32) {
    %c0_i32 = arith.constant 0 : i32
    %c0_i32_0 = arith.constant 0 : i32
    %c0_i32_1 = arith.constant 0 : i32
    return %c0_i32, %c0_i32_0 : i32, i32
  }
}

</mosaic_0001>

<bundles_post_ra>
// kernel: mospro_forward_single.2
= control target key start
LH: loop header
LB: loop body
LE: loop exit
PB: predicated region body
PF: predicated region fallthrough
CT: control target
= control target key end

     0   :  { %vm21_vm0 = vcmask 162816   ;;  %vm45_vm1 = vcmask 7168   ;;  %vm47_vm2 = vcmask 8192   ;;  %s276_s1 = inlined_call_operand.vmem [shape: f32[8,20], index: 1, kind: input, shape index: {}]   ;;  %s277_s0 = inlined_call_operand.vmem [shape: f32[8,20], index: 0, kind: input, shape index: {}]   ;;  %s278_s2 = inlined_call_operand.vmem [shape: f32[8,20], index: 2, kind: input, shape index: {}]   ;;  %s279_s3 = inlined_call_operand.vmem [shape: f32[1,2], index: 3, kind: output, shape index: {0}]   ;;  %s280_s4 = inlined_call_operand.vmem [shape: f32[8,20], index: 4, kind: output, shape index: {1}]   ;;  %s281_s5 = inlined_call_operand.vmem [shape: f32[8,20], index: 5, kind: output, shape index: {2}]  }
   0x1   :  { %v230_v0 = vld [vmem:[%s276_s1] sm:$0xff] }
   0x2   :  { %v235_v1 = vld [vmem:[%s277_s0] sm:$0xff]  ;;  %v49_v2 = vmul.f32 %v230_v0, %v230_v0 }
   0x3   :  { %v20_v3 = vmul.f32 %v230_v0, %v235_v1  ;;  %v244_v4 = vld [vmem:[%s278_s2] sm:$0xff] }
   0x4   :  { %v50_v5 = vsel %vm21_vm0, %v49_v2, 0.0  ;;  %v73_v7 = vmul.f32 %v244_v4, %v244_v4  ;;  %v33_v8 = vmul.f32 %v244_v4, %v235_v1 }
   0x5   :  { %v22_v6 = vsel %vm21_vm0, %v20_v3, 0.0  ;;  %51 = vadd.xlane.f32.xlu1 %v50_v5 }
   0x6   :  { %23 = vadd.xlane.f32.xlu0 %v22_v6  ;;  %v74_v9 = vsel %vm21_vm0, %v73_v7, 0.0  ;;  %v34_v10 = vsel %vm21_vm0, %v33_v8, 0.0 }
   0xd   :  { %75 = vadd.xlane.f32.xlu1 %v74_v9 }
   0xe   :  { %35 = vadd.xlane.f32.xlu0 %v34_v10 }
  0x78   :  { %v52_v11 = vpop.xlane.xlu1 %51 }
  0x79   :  { %v24_v12 = vpop.xlane.xlu0 %23  ;;  %v53_v13 = vrot.slane %v52_v11, 4 }
  0x7a   :  { %v25_v14 = vrot.slane %v24_v12, 4 }
  0x7b   :  { %v54_v16 = vadd.f32 %v53_v13, %v52_v11 }
  0x7c   :  { %v26_v15 = vadd.f32 %v25_v14, %v24_v12 }
  0x7d   :  { %v55_v19 = vrot.slane %v54_v16, 2 }
  0x7e   :  { %v27_v17 = vrot.slane %v26_v15, 2 }
  0x7f   :  { %v56_v28 = vadd.f32 %v55_v19, %v54_v16 }
  0x80   :  { %v28_v18 = vadd.f32 %v27_v17, %v26_v15  ;;  %v76_v20 = vpop.xlane.xlu1 %75 }
  0x81   :  { %v36_v21 = vpop.xlane.xlu0 %35  ;;  %v77_v22 = vrot.slane %v76_v20, 4  ;;  %v57_v33 = vrot.slane %v56_v28, 1 }
  0x82   :  { %v37_v23 = vrot.slane %v36_v21, 4  ;;  %v29_v24 = vrot.slane %v28_v18, 1 }
  0x83   :  { %v78_v25 = vadd.f32 %v77_v22, %v76_v20  ;;  %v58_v38 = vadd.f32 %v57_v33, %v56_v28 }
  0x84   :  { %v38_v26 = vadd.f32 %v37_v23, %v36_v21  ;;  %v30_v27 = vadd.f32 %v29_v24, %v28_v18 }
  0x85   :  { %v79_v29 = vrot.slane %v78_v25, 2 }
  0x86   :  { %v39_v30 = vrot.slane %v38_v26, 2  ;;  %177 = vpush %v30_v27 }
  0x87   :  { %v80_v32 = vadd.f32 %v79_v29, %v78_v25 }
  0x88   :  { %v40_v31 = vadd.f32 %v39_v30, %v38_v26 }
  0x89   :  { %v81_v35 = vrot.slane %v80_v32, 1 }
  0x8a   :  { %v41_v34 = vrot.slane %v40_v31, 1 }
  0x8b   :  { %v82_v37 = vadd.f32 %v81_v35, %v80_v32 }
  0x8c   :  { %v42_v36 = vadd.f32 %v41_v34, %v40_v31 }
  0x8e   :  { %179 = vpush %v42_v36 }
  0x8f   :  { %181 = vpush %v58_v38 }
  0x90   :  { %183 = vpush %v82_v37 }
  0xb7   :  { %s178_s0 = spop %177 }
  0xb8   :  { %v32_v39 = vstv %s178_s0 }
  0xbf   :  { %s180_s1 = spop %179 }
  0xc0   :  { %v44_v40 = vstv %s180_s1  ;;  %s182_s2 = spop %181 }
  0xc1   :  { %v46_v41 = vsel %vm45_vm1, %v32_v39, %v44_v40  ;;  %v60_v42 = vstv %s182_s2  ;;  %s184_s24 = spop %183 }
  0xc2   :  { %48 = vst.msk [vmem:[%s279_s3] sm:$0x1] %vm47_vm2, %v46_v41  ;;  %v61_v43 = vadd.f32 1e-30, %v60_v42  ;;  %v84_v44 = vstv %s184_s24 }
  0xc3   :  { %v85_v45 = vadd.f32 1e-30, %v84_v44 }
  0xc4   :  { %191 = vrsqrt.f32 %v61_v43  ;;  %vm68_vm5 = vweird.f32 %v61_v43 }
  0xc5   :  { %193 = vrsqrt.f32 %v85_v45  ;;  %vm92_vm7 = vweird.f32 %v85_v45 }
  0xca   :  { %v192_v46 = vpop.eup %191 }
  0xcb   :  { %v194_v47 = vpop.eup %193  ;;  %v63_v48 = vmul.f32 %v192_v46, %v61_v43  ;;  %vm69_vm3 = vweird.f32 %v192_v46 }
  0xcc   :  { %v87_v49 = vmul.f32 %v194_v47, %v85_v45  ;;  %vm93_vm4 = vweird.f32 %v194_v47  ;;  %vm70_vm6 = vmor %vm68_vm5, %vm69_vm3 }
  0xcd   :  { %v64_v50 = vmul.f32 %v192_v46, %v63_v48  ;;  %vm94_vm8 = vmor %vm92_vm7, %vm93_vm4 }
  0xce   :  { %v88_v51 = vmul.f32 %v194_v47, %v87_v49 }
  0xcf   :  { %v65_v52 = vmul.f32 0.5, %v64_v50 }
  0xd0   :  { %v89_v53 = vmul.f32 0.5, %v88_v51 }
  0xd1   :  { %v66_v54 = vsub.f32 1.5, %v65_v52 }
  0xd2   :  { %v90_v55 = vsub.f32 1.5, %v89_v53 }
  0xd3   :  { %v67_v56 = vmul.f32 %v192_v46, %v66_v54 }
  0xd4   :  { %v91_v57 = vmul.f32 %v194_v47, %v90_v55 }
  0xd5   :  { %v71_v59 = vsel %vm70_vm6, %v192_v46, %v67_v56 }
  0xd6   :  { %v95_v58 = vsel %vm94_vm8, %v194_v47, %v91_v57  ;;  %v72_v62 = vmul.f32 %v71_v59, %v230_v0 }
  0xd7   :  { %v258_v60 = vmul.f32 %v95_v58, %v244_v4 }
  0xd9   :  { %v97_v61 = vmul.f32 6.0, %v258_v60 }
  0xdb   :  { %v98_v63 = vmul.f32 %v97_v61, %v97_v61  ;;  %v122_v2 = vsub.f32 %v72_v62, %v97_v61  ;;  %v110_v7 = vmul.f32 %v97_v61, %v72_v62 }
  0xdd   :  { %v99_v3 = vsel %vm21_vm0, %v98_v63, 0.0  ;;  %v123_v5 = vmul.f32 %v122_v2, %v122_v2  ;;  %v111_v8 = vsel %vm21_vm0, %v110_v7, 0.0 }
  0xde   :  { %100 = vadd.xlane.f32.xlu2 %v99_v3 }
  0xdf   :  { %v124_v6 = vsel %vm21_vm0, %v123_v5, 0.0 }
  0xe0   :  { %125 = vadd.xlane.f32.xlu0 %v124_v6 }
  0xe6   :  { %112 = vadd.xlane.f32.xlu2 %v111_v8 }
 0x151   :  { %v101_v9 = vpop.xlane.xlu2 %100 }
 0x152   :  { %v102_v4 = vrot.slane %v101_v9, 4 }
 0x153   :  { %v126_v10 = vpop.xlane.xlu0 %125 }
 0x154   :  { %v103_v11 = vadd.f32 %v102_v4, %v101_v9  ;;  %v127_v12 = vrot.slane %v126_v10, 4 }
 0x156   :  { %v104_v13 = vrot.slane %v103_v11, 2  ;;  %v128_v0 = vadd.f32 %v127_v12, %v126_v10 }
 0x158   :  { %v105_v14 = vadd.f32 %v104_v13, %v103_v11  ;;  %v129_v15 = vrot.slane %v128_v0, 2 }
 0x159   :  { %v113_v16 = vpop.xlane.xlu2 %112 }
 0x15a   :  { %v114_v17 = vrot.slane %v113_v16, 4  ;;  %v106_v18 = vrot.slane %v105_v14, 1  ;;  %v130_v21 = vadd.f32 %v129_v15, %v128_v0 }
 0x15c   :  { %v115_v19 = vadd.f32 %v114_v17, %v113_v16  ;;  %v107_v20 = vadd.f32 %v106_v18, %v105_v14  ;;  %v131_v24 = vrot.slane %v130_v21, 1 }
 0x15e   :  { %v116_v22 = vrot.slane %v115_v19, 2  ;;  %185 = vpush %v107_v20  ;;  %v132_v27 = vadd.f32 %v131_v24, %v130_v21 }
 0x160   :  { %v117_v23 = vadd.f32 %v116_v22, %v115_v19 }
 0x162   :  { %v118_v25 = vrot.slane %v117_v23, 1 }
 0x164   :  { %v119_v26 = vadd.f32 %v118_v25, %v117_v23 }
 0x166   :  { %187 = vpush %v119_v26 }
 0x167   :  { %189 = vpush %v132_v27 }
 0x18f   :  { %s186_s3 = spop %185 }
 0x190   :  { %v109_v38 = vstv %s186_s3 }
 0x197   :  { %s188_s27 = spop %187 }
 0x198   :  { %s190_s28 = spop %189  ;;  %v121_v36 = vstv %s188_s27 }
 0x199   :  { %v134_v28 = vstv %s190_s28  ;;  %v135_v40 = vsub.f32 %v109_v38, %v121_v36 }
 0x19a   :  { %v136_v29 = vadd.f32 1e-30, %v134_v28 }
 0x19c   :  { %195 = vrcp.f32 %v136_v29  ;;  %v148_v33 = vand.u32 2147483648, %v136_v29  ;;  %v146_v35 = vand.u32 2147483647, %v136_v29  ;;  %vm142_vm10 = vweird.f32 %v136_v29 }
 0x19e   :  { %v149_v39 = vor.u32 1.1754944e-38, %v148_v33  ;;  %vm147_vm12 = vcmp.eq.f32.partialorder %v146_v35, 8.507059e+37 }
 0x1a2   :  { %v196_v30 = vpop.eup %195 }
 0x1a3   :  { %v138_v31 = vmul.f32 %v196_v30, %v136_v29  ;;  %vm143_vm9 = vweird.f32 %v196_v30 }
 0x1a4   :  { %vm144_vm11 = vmor %vm142_vm10, %vm143_vm9 }
 0x1a5   :  { %v139_v32 = vsub.f32 1.0, %v138_v31 }
 0x1a7   :  { %v140_v34 = vmul.f32 %v196_v30, %v139_v32 }
 0x1a9   :  { %v141_v37 = vadd.f32 %v196_v30, %v140_v34 }
 0x1ab   :  { %v145_v41 = vsel %vm144_vm11, %v196_v30, %v141_v37 }
 0x1ac   :  { %v150_v42 = vsel %vm147_vm12, %v149_v39, %v145_v41 }
 0x1ad   :  { %v151_v43 = vmul.f32 %v150_v42, %v135_v40 }
 0x1af   :  { %v152_v44 = vmax.f32 %v151_v43, 0.0 }
 0x1b1   :  { %v153_v45 = vmin.f32 %v152_v44, 1.0 }
 0x1b3   :  { %v155_v46 = vsub.f32 1.0, %v153_v45  ;;  %v154_v47 = vmul.f32 %v153_v45, %v72_v62 }
 0x1b5   :  { %v156_v48 = vmul.f32 %v155_v46, %v258_v60 }
 0x1b7   :  { %v157_v49 = vadd.f32 %v156_v48, %v154_v47 }
 0x1b9   :  { %v159_v50 = vmul.f32 %v157_v49, %v235_v1  ;;  %158 = vst.msk [vmem:[%s280_s4] sm:$0xff] %vm21_vm0, %v157_v49 }
 0x1bb   :  { %v160_v51 = vsel %vm21_vm0, %v159_v50, 0.0 }
 0x1bc   :  { %161 = vadd.xlane.f32.xlu1 %v160_v51 }
 0x22f   :  { %v162_v52 = vpop.xlane.xlu1 %161 }
 0x230   :  { %v163_v53 = vsub.f32 %v157_v49, %v162_v52 }
 0x232   :  { %164 = vst.msk [vmem:[%s281_s5] sm:$0xff] %vm21_vm0, %v163_v53 }

// kernel: mospro_forward_single.3
= control target key start
LH: loop header
LB: loop body
LE: loop exit
PB: predicated region body
PF: predicated region fallthrough
CT: control target
= control target key end

     0   :  { %vm32_vm0 = vcmask 162816   ;;  %s428_s28 = smov 60   ;;  %v429_v9 = vmov 0   ;;  %s431_s11 = smov 40   ;;  %v61_v28 = vlaneseq  ;;  %vm108_vm1 = vcmask 326656   ;;  %s587_s2 = inlined_call_operand.vmem [shape: f32[8,20], index: 2, kind: input, shape index: {}]   ;;  %s588_s5 = inlined_call_operand.vmem [shape: f32[8,20], index: 5, kind: input, shape index: {}]   ;;  %s589_s0 = inlined_call_operand.vmem [shape: s32[16,1], index: 0, kind: input, shape index: {}]   ;;  %s590_s4 = inlined_call_operand.vmem [shape: f32[8,20], index: 4, kind: input, shape index: {}]   ;;  %s591_s1 = inlined_call_operand.vmem [shape: s32[16,1], index: 1, kind: input, shape index: {}]   ;;  %s592_s3 = inlined_call_operand.vmem [shape: f32[8,20], index: 3, kind: input, shape index: {}]   ;;  %s593_s6 = inlined_call_operand.vmem [shape: f32[1,2], index: 6, kind: input, shape index: {}]   ;;  %s594_s7 = inlined_call_operand.vmem [shape: f32[16,4], index: 7, kind: output, shape index: {}]  }
   0x1   :  { %v26_v0 = vld [vmem:[%s587_s2] sm:$0xff]  ;;  %400 = vset.pattern.permute.xlu2 %v429_v9  ;;  %401 = vset.pattern.permute.xlu0 %v429_v9  ;;  %v64_v18 = vld [vmem:[%s589_s0 + $0x8] sm:$0xff]  ;;  %s432_s14 = smov 80   ;;  %vm110_vm4 = vcmask 490496   ;;  %vm112_vm5 = vcmask 654336   ;;  %v433_v36 = vmov 0.0  }
   0x2   :  { %v29_v1 = vld [vmem:[%s588_s5] sm:$0xff]  ;;  %100 = vrot.lane.b32.xlu2 %v26_v0, %s428_s28  ;;  %s430_s5 = smov 20   ;;  %402 = vset.pattern.permute.xlu1 %v429_v9  ;;  %v78_v24 = vld [vmem:[%s591_s1 + $0x8] sm:$0xff]  ;;  %v62_v32 = vand.u32 127, %v61_v28  ;;  %vm114_vm6 = vcmask 64512   ;;  %s436_s18 = smov 88  }
   0x3   :  { %v31_v2 = vmul.f32 %v29_v1, %v26_v0  ;;  %v63_v7 = vld [vmem:[%s589_s0] sm:$0xff]  ;;  %s437_s19 = smov 68   ;;  %s438_s22 = smov 127   ;;  %vm361_vm9 = vcmask 7168   ;;  %vm364_vm14 = vcmask 15360  }
   0x4   :  { %v28_v8 = vld [vmem:[%s590_s4] sm:$0xff]  ;;  %s439_s23 = smov 3  }
   0x5   :  { %v33_v3 = vsel %vm32_vm0, %v31_v2, 0.0  ;;  %92 = vrot.lane.b32.xlu1 %v28_v8, %s430_s5  ;;  %v77_v10 = vld [vmem:[%s591_s1] sm:$0xff]  ;;  %s434_s1 = smov 48  }
   0x6   :  { %34 = vadd.xlane.f32.xlu0 %v33_v3  ;;  %v27_v29 = vld [vmem:[%s592_s3] sm:$0xff]  ;;  %s435_s3 = smov 108  }
   0xa   :  { %66 = vperm.xlu2 %400, %v63_v7  }
   0xd   :  { %96 = vrot.lane.b32.xlu1 %v29_v1, %s431_s11 }
  0x12   :  { %80 = vperm.xlu2 %400, %v77_v10  }
  0x5c   :  { %v101_v25 = vpop.permute.xlu2 %100 }
  0x64   :  { %v67_v27 = vpop.permute.xlu2 %66 }
  0x65   :  { %vm71_vm2 = vcmp.eq.s32.totalorder %v62_v32, %v67_v27 }
  0x66   :  { %v377_v37 = vsel %vm71_vm2, 1.0, %v433_v36 }
  0x6c   :  { %v81_v31 = vpop.permute.xlu2 %80 }
  0x6d   :  { %vm85_vm7 = vcmp.eq.s32.totalorder %v62_v32, %v81_v31 }
  0x6e   :  { %v379_v48 = vsel %vm85_vm7, 1.0, %v433_v36 }
  0x77   :  { %v93_v26 = vpop.permute.xlu1 %92 }
  0x78   :  { %v107_v33 = vsel %vm32_vm0, %v27_v29, %v93_v26 }
  0x79   :  { %v35_v4 = vpop.xlane.xlu0 %34 }
  0x7a   :  { %v36_v5 = vsub.f32 %v29_v1, %v35_v4 }
  0x7c   :  { %v37_v6 = vsel %vm32_vm0, %v36_v5, -inf }
  0x7d   :  { %38 = vmax.xlane.f32.xlu0 %v37_v6 }
  0x7f   :  { %v97_v30 = vpop.permute.xlu1 %96 }
  0x80   :  { %v109_v35 = vsel %vm108_vm1, %v107_v33, %v97_v30 }
  0x81   :  { %v111_v40 = vsel %vm110_vm4, %v109_v35, %v101_v25  ;;  %vm370_vm4 = vcmask 31744  }
  0x91   :  { %69 = vperm.xlu0 %401, %v64_v18  }
  0xf0   :  { %v39_v11 = vpop.xlane.xlu0 %38 }
  0xf1   :  { %v40_v12 = vrot.slane %v39_v11, 4 }
  0xf3   :  { %v41_v13 = vmax.f32 %v39_v11, %v40_v12 }
  0xf5   :  { %v42_v14 = vrot.slane %v41_v13, 2 }
  0xf7   :  { %v43_v15 = vmax.f32 %v41_v13, %v42_v14 }
  0xf9   :  { %v44_v16 = vrot.slane %v43_v15, 1 }
  0xfb   :  { %v45_v17 = vmax.f32 %v43_v15, %v44_v16 }
  0xfd   :  { %384 = vpush %v45_v17 }
 0x103   :  { %v70_v34 = vpop.permute.xlu0 %69 }
 0x104   :  { %vm72_vm3 = vcmp.eq.s32.totalorder %v62_v32, %v70_v34 }
 0x105   :  { %v378_v39 = vsel %vm72_vm3, 1.0, %v433_v36  ;;  %vm367_vm3 = vcmask 23552  }
 0x12e   :  { %s385_s13 = spop %384 }
 0x12f   :  { %v47_v19 = vstv %s385_s13 }
 0x130   :  { %v48_v20 = vsub.f32 %v36_v5, %v47_v19 }
 0x132   :  { %v49_v21 = vmul.f32 1.442695, %v48_v20 }
 0x134   :  { %414 = vpow2.f32 %v49_v21 }
 0x13a   :  { %v415_v22 = vpop.eup %414 }
 0x13b   :  { %104 = vrot.lane.b32.xlu1 %v415_v22, %s432_s14  ;;  %v51_v23 = vsel %vm32_vm0, %v415_v22, 0.0 }
 0x13c   :  { %52 = vadd.xlane.f32.xlu2 %v51_v23 }
 0x143   :  { %83 = vperm.xlu1 %402, %v78_v24  }
 0x1ad   :  { %v105_v38 = vpop.permute.xlu1 %104 }
 0x1ae   :  { %v113_v41 = vsel %vm112_vm5, %v111_v40, %v105_v38 }
 0x1af   :  { %136 = vmatpush.msra.mxu0 %v113_v41  ;;  %383 = vmatpush.msra.mxu1 %v113_v41  ;;  %v53_v42 = vpop.xlane.xlu2 %52  ;;  %v555_v41 = vld [vmem:[%s593_s6] ss:$0 sm:$0xff] }
 0x1b0   :  { %v54_v43 = vrot.slane %v53_v42, 4  ;;  %381 = vmatmul.msk.f32.vlgmr.msra.gmra.mxu0 %vm114_vm6, %v377_v37  ;;  %382 = vmatmul.msk.f32.vlgmr.msra.gmra.mxu1 %vm114_vm6, %v378_v39 }
 0x1b2   :  { %v55_v44 = vadd.f32 %v54_v43, %v53_v42 }
 0x1b4   :  { %v56_v45 = vrot.slane %v55_v44, 2 }
 0x1b5   :  { %v84_v46 = vpop.permute.xlu1 %83 }
 0x1b6   :  { %vm86_vm8 = vcmp.eq.s32.totalorder %v62_v32, %v84_v46  ;;  %v57_v47 = vadd.f32 %v56_v45, %v55_v44 }
 0x1b7   :  { %v380_v49 = vsel %vm86_vm8, 1.0, %v433_v36 }
 0x1b8   :  { %v408_v50 = vpack.i.bf16 %v380_v49, %v379_v48  ;;  %v58_v51 = vrot.slane %v57_v47, 1 }
 0x1ba   :  { %409 = vrot.lane.b32.xlu0 %v408_v50, %s431_s11  ;;  %404 = vrot.lane.b32.xlu1 %v408_v50, %s430_s5  ;;  %v59_v52 = vadd.f32 %v58_v51, %v57_v47 }
 0x1bc   :  { %386 = vpush %v59_v52 }
 0x1ed   :  { %s387_s6 = spop %386 }
 0x22c   :  { %v405_v55 = vpop.permute.xlu1 %404  ;;  %v410_v60 = vpop.permute.xlu0 %409 }
 0x22d   :  { %v138_v53 = vpop.f32.mrf.mxu0  ;;  %v512_v54 = vpop.f32.mrf.mxu1  ;;  %v407_v56 = vunpack.i.h.bf16 %v405_v55  ;;  %v406_v57 = vunpack.i.l.bf16 %v405_v55  ;;  %v412_v61 = vunpack.i.h.bf16 %v410_v60  ;;  %v411_v62 = vunpack.i.l.bf16 %v410_v60 }
 0x22e   :  { %258 = vrot.lane.b32.xlu2 %v138_v53, %s434_s1  ;;  %238 = vrot.lane.b32.xlu0 %v512_v54, %s435_s3  ;;  %v144_v1 = vmul.f32 %v379_v48, %v138_v53  ;;  %v145_v3 = vmul.f32 %v380_v49, %v512_v54 }
 0x22f   :  { %214 = vrot.lane.b32.xlu1 %v138_v53, %s436_s18  ;;  %v161_v58 = vmul.f32 %v407_v56, %v512_v54  ;;  %v160_v59 = vmul.f32 %v406_v57, %v138_v53  ;;  %v183_v63 = vmul.f32 %v412_v61, %v512_v54  ;;  %v182_v0 = vmul.f32 %v411_v62, %v138_v53 }
 0x230   :  { %v146_v2 = vsel %vm32_vm0, %v144_v1, 0.0  ;;  %v149_v4 = vsel %vm32_vm0, %v145_v3, 0.0  ;;  %v567_v3 = vstv %s387_s6 }
 0x236   :  { %202 = vrot.lane.b32.xlu2 %v512_v54, %s437_s19  ;;  %200 = vrot.lane.b32.xlu0 %v138_v53, %s437_s19 }
 0x237   :  { %216 = vrot.lane.b32.xlu1 %v512_v54, %s436_s18 }
 0x23e   :  { %166 = vrot.lane.b32.xlu0 %v161_v58, %s435_s3  ;;  %164 = vrot.lane.b32.xlu2 %v160_v59, %s435_s3 }
 0x23f   :  { %236 = vrot.lane.b32.xlu1 %v138_v53, %s435_s3 }
 0x246   :  { %188 = vrot.lane.b32.xlu0 %v183_v63, %s436_s18  ;;  %186 = vrot.lane.b32.xlu2 %v182_v0, %s436_s18 }
 0x247   :  { %260 = vrot.lane.b32.xlu1 %v512_v54, %s434_s1 }
 0x271   :  { %147 = vadd.xlane.f32.xlu1 %v146_v2 }
 0x279   :  { %150 = vadd.xlane.f32.xlu1 %v149_v4 }
 0x288   :  { %v259_v5 = vpop.permute.xlu2 %258 }
 0x289   :  { %v264_v6 = vsel %vm32_vm0, %v259_v5, 0.0 }
 0x28a   :  { %265 = vadd.xlane.f32.xlu0 %v264_v6 }
 0x290   :  { %v203_v17 = vpop.permute.xlu2 %202 }
 0x291   :  { %v207_v29 = vmul.f32 %v203_v17, %v512_v54 }
 0x293   :  { %v211_v30 = vsel %vm32_vm0, %v207_v29, 0.0 }
 0x298   :  { %v165_v20 = vpop.permute.xlu2 %164 }
 0x299   :  { %v170_v21 = vsel %vm32_vm0, %v165_v20, 0.0 }
 0x2a0   :  { %v239_v11 = vpop.permute.xlu0 %238  ;;  %v187_v27 = vpop.permute.xlu2 %186 }
 0x2a1   :  { %v215_v7 = vpop.permute.xlu1 %214  ;;  %v243_v13 = vmul.f32 %v239_v11, %v512_v54  ;;  %v192_v28 = vsel %vm32_vm0, %v187_v27, 0.0 }
 0x2a2   :  { %v220_v8 = vmul.f32 %v215_v7, %v138_v53 }
 0x2a4   :  { %224 = vrot.lane.b32.xlu0 %v220_v8, %s435_s3 }
 0x2a8   :  { %v201_v16 = vpop.permute.xlu0 %200 }
 0x2a9   :  { %v217_v9 = vpop.permute.xlu1 %216  ;;  %v206_v24 = vmul.f32 %v201_v16, %v138_v53 }
 0x2aa   :  { %v221_v10 = vmul.f32 %v217_v9, %v512_v54 }
 0x2ab   :  { %v208_v25 = vsel %vm32_vm0, %v206_v24, 0.0 }
 0x2ac   :  { %226 = vrot.lane.b32.xlu0 %v221_v10, %s435_s3 }
 0x2b0   :  { %v167_v19 = vpop.permute.xlu0 %166 }
 0x2b1   :  { %v237_v12 = vpop.permute.xlu1 %236  ;;  %v173_v26 = vsel %vm32_vm0, %v167_v19, 0.0 }
 0x2b2   :  { %v242_v18 = vmul.f32 %v237_v12, %v138_v53 }
 0x2b4   :  { %248 = vrot.lane.b32.xlu0 %v243_v13, %s436_s18 }
 0x2b8   :  { %v189_v22 = vpop.permute.xlu0 %188 }
 0x2b9   :  { %v261_v14 = vpop.permute.xlu1 %260  ;;  %v195_v23 = vsel %vm32_vm0, %v189_v22, 0.0 }
 0x2ba   :  { %v267_v15 = vsel %vm32_vm0, %v261_v14, 0.0 }
 0x2bb   :  { %268 = vadd.xlane.f32.xlu2 %v267_v15 }
 0x2d3   :  { %246 = vrot.lane.b32.xlu2 %v242_v18, %s436_s18 }
 0x2de   :  { %171 = vadd.xlane.f32.xlu0 %v170_v21 }
 0x2e4   :  { %v148_v44 = vpop.xlane.xlu1 %147 }
 0x2e5   :  { %v273_v45 = vadd.f32 %v555_v41, %v148_v44 }
 0x2e6   :  { %196 = vadd.xlane.f32.xlu0 %v195_v23 }
 0x2ec   :  { %v151_v49 = vpop.xlane.xlu1 %150 }
 0x2ed   :  { %v274_v56 = vadd.f32 %v555_v41, %v151_v49 }
 0x2ee   :  { %209 = vadd.xlane.f32.xlu0 %v208_v25 }
 0x2fc   :  { %174 = vadd.xlane.f32.xlu2 %v173_v26 }
 0x2fd   :  { %v266_v31 = vpop.xlane.xlu0 %265 }
 0x2fe   :  { %v309_v4 = vsub.f32 %v567_v3, %v266_v31 }
 0x304   :  { %193 = vadd.xlane.f32.xlu2 %v192_v28 }
 0x30c   :  { %212 = vadd.xlane.f32.xlu2 %v211_v30 }
 0x316   :  { %v225_v32 = vpop.permute.xlu0 %224 }
 0x317   :  { %v230_v33 = vsel %vm32_vm0, %v225_v32, 0.0 }
 0x318   :  { %231 = vadd.xlane.f32.xlu1 %v230_v33 }
 0x31e   :  { %v227_v34 = vpop.permute.xlu0 %226 }
 0x31f   :  { %v233_v35 = vsel %vm32_vm0, %v227_v34, 0.0 }
 0x320   :  { %234 = vadd.xlane.f32.xlu0 %v233_v35 }
 0x326   :  { %v249_v36 = vpop.permute.xlu0 %248 }
 0x327   :  { %v255_v37 = vsel %vm32_vm0, %v249_v36, 0.0 }
 0x328   :  { %256 = vadd.xlane.f32.xlu1 %v255_v37 }
 0x32e   :  { %v549_v38 = vpop.xlane.xlu2 %268 }
 0x32f   :  { %v310_v26 = vsub.f32 %v567_v3, %v549_v38 }
 0x336   :  { %v247_v39 = vpop.permute.xlu2 %246 }
 0x337   :  { %v252_v40 = vsel %vm32_vm0, %v247_v39, 0.0 }
 0x338   :  { %253 = vadd.xlane.f32.xlu2 %v252_v40 }
 0x350   :  { %293 = vrot.lane.b32.xlu2 %v555_v41, %s438_s22 }
 0x351   :  { %v172_v42 = vpop.xlane.xlu0 %171 }
 0x352   :  { %v277_v51 = vadd.f32 %v555_v41, %v172_v42 }
 0x359   :  { %v197_v43 = vpop.xlane.xlu0 %196 }
 0x361   :  { %v210_v46 = vpop.xlane.xlu0 %209 }
 0x362   :  { %v559_v47 = vsub.f32 %v273_v45, %v210_v46 }
 0x364   :  { %v281_v29 = vsub.f32 %v559_v47, %v555_v41 }
 0x36f   :  { %v175_v48 = vpop.xlane.xlu2 %174 }
 0x370   :  { %v278_v57 = vadd.f32 %v555_v41, %v175_v48 }
 0x377   :  { %v194_v50 = vpop.xlane.xlu2 %193 }
 0x37f   :  { %v213_v55 = vpop.xlane.xlu2 %212 }
 0x380   :  { %v276_v59 = vsub.f32 %v274_v56, %v213_v55 }
 0x382   :  { %v282_v39 = vsub.f32 %v276_v59, %v555_v41 }
 0x38b   :  { %v232_v52 = vpop.xlane.xlu1 %231 }
 0x38c   :  { %v279_v53 = vsub.f32 %v277_v51, %v232_v52 }
 0x38e   :  { %v362_v54 = vsel %vm361_vm9, %v559_v47, %v279_v53  ;;  %285 = vrot.lane.b32.xlu1 %v279_v53, %s438_s22 }
 0x393   :  { %v235_v58 = vpop.xlane.xlu0 %234 }
 0x394   :  { %v280_v60 = vsub.f32 %v278_v57, %v235_v58 }
 0x396   :  { %v565_v61 = vsel %vm361_vm9, %v276_v59, %v280_v60  ;;  %287 = vrot.lane.b32.xlu0 %v280_v60, %s438_s22 }
 0x39b   :  { %v257_v20 = vpop.xlane.xlu1 %256 }
 0x39c   :  { %v301_v21 = vsub.f32 %v197_v43, %v257_v20 }
 0x39e   :  { %v303_v22 = vsub.f32 0.0, %v301_v21 }
 0x3a0   :  { %v306_v23 = vmul.f32 1.442695, %v303_v22 }
 0x3ab   :  { %v254_v62 = vpop.xlane.xlu2 %253 }
 0x3ac   :  { %v300_v63 = vsub.f32 %v194_v50, %v254_v62 }
 0x3ae   :  { %v302_v0 = vsub.f32 0.0, %v300_v63 }
 0x3b0   :  { %v304_v1 = vmul.f32 1.442695, %v302_v0 }
 0x3b2   :  { %416 = vpow2.f32 %v304_v1 }
 0x3b8   :  { %v417_v2 = vpop.eup %416 }
 0x3b9   :  { %v311_v5 = vmul.f32 %v417_v2, %v266_v31  ;;  %v315_v15 = vmul.f32 %v417_v2, %v567_v3  ;;  %v294_v31 = vpop.permute.xlu2 %293 }
 0x3bb   :  { %v313_v6 = vadd.f32 %v311_v5, %v309_v4 }
 0x3bd   :  { %418 = vrcp.f32 %v313_v6  ;;  %v328_v10 = vand.u32 2147483648, %v313_v6  ;;  %v326_v12 = vand.u32 2147483647, %v313_v6  ;;  %vm322_vm11 = vweird.f32 %v313_v6 }
 0x3be   :  { %420 = vpow2.f32 %v306_v23 }
 0x3bf   :  { %v329_v14 = vor.u32 1.1754944e-38, %v328_v10  ;;  %vm327_vm13 = vcmp.eq.f32.partialorder %v326_v12, 8.507059e+37 }
 0x3c3   :  { %v419_v7 = vpop.eup %418 }
 0x3c4   :  { %v318_v8 = vmul.f32 %v419_v7, %v313_v6  ;;  %vm323_vm10 = vweird.f32 %v419_v7  ;;  %v421_v24 = vpop.eup %420 }
 0x3c5   :  { %vm324_vm12 = vmor %vm322_vm11, %vm323_vm10  ;;  %v312_v25 = vmul.f32 %v421_v24, %v549_v38  ;;  %v316_v53 = vmul.f32 %v421_v24, %v567_v3 }
 0x3c6   :  { %v319_v9 = vsub.f32 1.0, %v318_v8 }
 0x3c7   :  { %v314_v27 = vadd.f32 %v312_v25, %v310_v26 }
 0x3c8   :  { %v320_v11 = vmul.f32 %v419_v7, %v319_v9 }
 0x3c9   :  { %422 = vrcp.f32 %v314_v27  ;;  %v343_v46 = vand.u32 2147483648, %v314_v27  ;;  %vm337_vm0 = vweird.f32 %v314_v27  ;;  %v341_v47 = vand.u32 2147483647, %v314_v27 }
 0x3ca   :  { %v321_v13 = vadd.f32 %v419_v7, %v320_v11 }
 0x3cb   :  { %v344_v52 = vor.u32 1.1754944e-38, %v343_v46  ;;  %vm342_vm2 = vcmp.eq.f32.partialorder %v341_v47, 8.507059e+37 }
 0x3cc   :  { %v325_v16 = vsel %vm324_vm12, %v419_v7, %v321_v13 }
 0x3cd   :  { %v330_v17 = vsel %vm327_vm13, %v329_v14, %v325_v16 }
 0x3ce   :  { %v331_v18 = vmul.f32 %v330_v17, %v315_v15 }
 0x3cf   :  { %v423_v28 = vpop.eup %422 }
 0x3d0   :  { %v365_v19 = vsel %vm364_vm14, %v362_v54, %v331_v18  ;;  %v333_v32 = vmul.f32 %v423_v28, %v314_v27  ;;  %vm338_vm15 = vweird.f32 %v423_v28 }
 0x3d1   :  { %vm339_vm1 = vmor %vm337_vm0, %vm338_vm15 }
 0x3d2   :  { %v334_v35 = vsub.f32 1.0, %v333_v32 }
 0x3d4   :  { %v335_v42 = vmul.f32 %v423_v28, %v334_v35 }
 0x3d6   :  { %v336_v44 = vadd.f32 %v423_v28, %v335_v42 }
 0x3d8   :  { %v340_v51 = vsel %vm339_vm1, %v423_v28, %v336_v44 }
 0x3d9   :  { %v345_v41 = vsel %vm342_vm2, %v344_v52, %v340_v51 }
 0x3da   :  { %v346_v54 = vmul.f32 %v345_v41, %v316_v53 }
 0x3dc   :  { %v366_v59 = vsel %vm364_vm14, %v565_v61, %v346_v54 }
 0x400   :  { %v286_v30 = vpop.permute.xlu1 %285 }
 0x401   :  { %v291_v33 = vadd.f32 %v286_v30, %v281_v29 }
 0x403   :  { %v296_v34 = vsub.f32 %v291_v33, %v294_v31 }
 0x405   :  { %v298_v36 = vmul.f32 0.5, %v296_v34 }
 0x407   :  { %v347_v37 = vmul.f32 1.442695, %v298_v36 }
 0x408   :  { %v288_v40 = vpop.permute.xlu0 %287 }
 0x409   :  { %424 = vpow2.f32 %v347_v37  ;;  %v292_v38 = vadd.f32 %v288_v40, %v282_v39 }
 0x40b   :  { %v297_v43 = vsub.f32 %v292_v38, %v294_v31 }
 0x40d   :  { %v299_v45 = vmul.f32 0.5, %v297_v43 }
 0x40f   :  { %v425_v48 = vpop.eup %424  ;;  %v349_v49 = vmul.f32 1.442695, %v299_v45 }
 0x410   :  { %v351_v50 = vmul.f32 %v425_v48, %v331_v18 }
 0x411   :  { %426 = vpow2.f32 %v349_v49 }
 0x412   :  { %355 = vrot.lane.b32.xlu0 %v351_v50, %s439_s23 }
 0x417   :  { %v427_v55 = vpop.eup %426 }
 0x418   :  { %v352_v56 = vmul.f32 %v427_v55, %v346_v54 }
 0x41a   :  { %357 = vrot.lane.b32.xlu1 %v352_v56, %s439_s23 }
 0x484   :  { %v356_v57 = vpop.permute.xlu0 %355 }
 0x485   :  { %v368_v58 = vsel %vm367_vm3, %v365_v19, %v356_v57 }
 0x486   :  { %371 = vst.msk [vmem:[%s594_s7] sm:$0xff] %vm370_vm4, %v368_v58 }
 0x48c   :  { %v358_v60 = vpop.permute.xlu1 %357 }
 0x48d   :  { %v369_v62 = vsel %vm367_vm3, %v366_v59, %v358_v60 }
 0x48e   :  { %372 = vst.msk [vmem:[%s594_s7 + $0x8] sm:$0xff] %vm370_vm4, %v369_v62 }

</bundles_post_ra>
